<compile_context>
chip_gen: v5e
topology: v5e:2x2
jax: 0.10.0
libtpu: 0.0.40
codegen_flags: <defaults>
</compile_context>

<pallas_src>
import jax
import jax.numpy as jnp
from jax.experimental import pallas as pl
from jax.experimental.pallas import tpu as pltpu


def _round_up(n, m):
    return ((n + m - 1) // m) * m


def _generate_node_kernel(
    ne_ref,   # (TB, Hp)  node_embedding tile, bf16
    cc_ref,   # (TB, Hp)  current_context tile, bf16
    nl_ref,   # (TB, Ep)  label-embedding tile, bf16
    w_ref,    # (Dp, 2*Np) packed [value | gate] weights, bf16 (grid-invariant)
    b_ref,    # (1, 2*Np)  packed bias, f32 (grid-invariant)
    out_ref,  # (TB, Np)   gated output tile, f32
):
    hp = ne_ref.shape[1]
    ep = nl_ref.shape[1]
    np_ = out_ref.shape[1]

    # Single fused (TB, D) @ (D, 2*Np) matmul, expressed as three accumulating
    # dots over the K-slices of the packed weight (avoids an in-VMEM concat).
    z = jnp.dot(ne_ref[...], w_ref[0:hp, :], preferred_element_type=jnp.float32)
    z = z + jnp.dot(cc_ref[...], w_ref[hp:2 * hp, :],
                    preferred_element_type=jnp.float32)
    z = z + jnp.dot(nl_ref[...], w_ref[2 * hp:2 * hp + ep, :],
                    preferred_element_type=jnp.float32)
    z = z + b_ref[...]

    # val / gate split at a 128-lane boundary (Np is a multiple of 128).
    val = jnp.tanh(z[:, :np_])
    gate = jax.nn.sigmoid(z[:, np_:])
    out_ref[...] = (val * gate).astype(out_ref.dtype)


def generate_node_forward(params, node_embedding, node_label, current_context):
    """JAX/Pallas equivalent of GenerateNode.forward (eval mode).

    node_embedding : (B, 1, H) float32
    node_label     : (B,)      int32 indices into op embedding table
    current_context: (B, 1, H) float32
    Returns (l_child, r_child, node_label_) with shapes (B,H), (B,H), (B,E).
    """
    H = params["hidden_size"]
    E = params["embedding_size"]
    Hp, Ep = params["h_pad"], params["e_pad"]
    w, b = params["w_packed"], params["b_packed"]
    Np = b.shape[1] // 2
    Dp = w.shape[0]

    # Embedding lookup (needed as a return value anyway; dropout = identity).
    node_label_ = params["embeddings"][node_label]            # (B, E) f32
    ne = jnp.squeeze(node_embedding, axis=1)                   # (B, H)
    cc = jnp.squeeze(current_context, axis=1)                  # (B, H)

    B = ne.shape[0]

    # --- batch tiling: minimal 8-row padding, >=2 grid steps when Bp >= 16 ---
    B8 = _round_up(max(B, 1), 8)
    if B8 >= 16:
        n_steps = max(2, pl.cdiv(B8, 1024))     # both v7x TensorCores get work
    else:
        n_steps = 1
    TB = _round_up(pl.cdiv(B8, n_steps), 8)
    Bp = TB * n_steps

    def prep(a, width, padded_width):
        # bf16 activations halve the input DMA bytes (accumulation stays f32).
        a = a.astype(jnp.bfloat16)
        return jnp.pad(a, ((0, Bp - B), (0, padded_width - width)))

    ne_b = prep(ne, H, Hp)
    cc_b = prep(cc, H, Hp)
    nl_b = prep(node_label_, E, Ep)

    out = pl.pallas_call(
        _generate_node_kernel,
        out_shape=jax.ShapeDtypeStruct((Bp, Np), jnp.float32),
        grid=(n_steps,),
        in_specs=[
            pl.BlockSpec((TB, Hp), lambda i: (i, 0)),
            pl.BlockSpec((TB, Hp), lambda i: (i, 0)),
            pl.BlockSpec((TB, Ep), lambda i: (i, 0)),
            pl.BlockSpec((Dp, 2 * Np), lambda i: (0, 0)),      # resident weights
            pl.BlockSpec((1, 2 * Np), lambda i: (0, 0)),       # resident bias
        ],
        out_specs=pl.BlockSpec((TB, Np), lambda i: (i, 0)),
        compiler_params=pltpu.CompilerParams(
            dimension_semantics=("parallel",),
        ),
    )(ne_b, cc_b, nl_b, w, b)

    l_child = out[:B, :H]
    r_child = out[:B, H:2 * H]
    return l_child, r_child, node_label_


def init_params(key, hidden_size, op_nums, embedding_size):
    """Creates raw Linear params and packs them once for the fused kernel."""
    H, E = hidden_size, embedding_size
    D = 2 * H + E
    keys = jax.random.split(key, 9)
    scale = 1.0 / jnp.sqrt(jnp.float32(D))

    def lin(kw, kb):
        w = jax.random.uniform(kw, (D, H), jnp.float32, -scale, scale)
        b = jax.random.uniform(kb, (1, H), jnp.float32, -scale, scale)
        return w, b

    emb = jax.random.normal(keys[0], (op_nums, E), jnp.float32)
    wl, bl = lin(keys[1], keys[2])
    wr, br = lin(keys[3], keys[4])
    wlg, blg = lin(keys[5], keys[6])
    wrg, brg = lin(keys[7], keys[8])

    # --- one-time packing: [val_l|val_r|pad | gate_l|gate_r|pad] -> (Dp, 2*Np) ---
    Hp = _round_up(H, 8)
    Ep = _round_up(E, 8)
    Np = _round_up(2 * H, 128)          # lane-dense output width

    def pad_cols(m, width):
        return jnp.pad(m, ((0, 0), (0, width - m.shape[1])))

    w_val = pad_cols(jnp.concatenate([wl, wr], axis=1), Np)     # (D, Np)
    w_gate = pad_cols(jnp.concatenate([wlg, wrg], axis=1), Np)  # (D, Np)
    w_full = jnp.concatenate([w_val, w_gate], axis=1)           # (D, 2*Np) f32
    # Pad each K segment (ne / cc / label) to a multiple of 8 sublanes so the
    # in-kernel K-slices are tile-aligned.
    seg_ne = jnp.pad(w_full[:H], ((0, Hp - H), (0, 0)))
    seg_cc = jnp.pad(w_full[H:2 * H], ((0, Hp - H), (0, 0)))
    seg_nl = jnp.pad(w_full[2 * H:], ((0, Ep - E), (0, 0)))
    w_packed = jnp.concatenate([seg_ne, seg_cc, seg_nl], axis=0).astype(jnp.bfloat16)

    b_packed = jnp.concatenate(
        [pad_cols(jnp.concatenate([bl, br], axis=1), Np),
         pad_cols(jnp.concatenate([blg, brg], axis=1), Np)],
        axis=1,
    )                                                           # (1, 2*Np) f32

    return {
        "embeddings": emb,
        "hidden_size": H,
        "embedding_size": E,
        "h_pad": Hp,
        "e_pad": Ep,
        "w_packed": w_packed,
        "b_packed": b_packed,
        # raw f32 params kept only for the host-side reference check
        "raw": {"wl": wl, "bl": bl, "wr": wr, "br": br,
                "wlg": wlg, "blg": blg, "wrg": wrg, "brg": brg},
    }


if __name__ == "__main__":
    hidden_size = 32
    embedding_size = 32
    op_nums = 8
    batch = 2

    key = jax.random.PRNGKey(0)
    kp, k1, k2, k3 = jax.random.split(key, 4)

    params = init_params(kp, hidden_size, op_nums, embedding_size)

    node_embedding = jax.random.normal(k1, (batch, 1, hidden_size), jnp.float32)
    current_context = jax.random.normal(k2, (batch, 1, hidden_size), jnp.float32)
    node_label = jax.random.randint(k3, (batch,), 0, op_nums, dtype=jnp.int32)

    l_child, r_child, node_label_ = generate_node_forward(
        params, node_embedding, node_label, current_context
    )
    jax.block_until_ready((l_child, r_child, node_label_))

    # shape sanity
    assert l_child.shape == (batch, hidden_size)
    assert r_child.shape == (batch, hidden_size)
    assert node_label_.shape == (batch, embedding_size)

    # pure-JAX f32 reference (eval-mode dropout = identity)
    raw = params["raw"]
    ne = jnp.squeeze(node_embedding, 1)
    cc = jnp.squeeze(current_context, 1)
    nl = params["embeddings"][node_label]
    x = jnp.concatenate([ne, cc, nl], axis=1)
    l_ref = jnp.tanh(x @ raw["wl"] + raw["bl"]) * jax.nn.sigmoid(x @ raw["wlg"] + raw["blg"])
    r_ref = jnp.tanh(x @ raw["wr"] + raw["br"]) * jax.nn.sigmoid(x @ raw["wrg"] + raw["brg"])
    assert jnp.allclose(l_child, l_ref, atol=3e-2, rtol=3e-2), "l_child mismatch"
    assert jnp.allclose(r_child, r_ref, atol=3e-2, rtol=3e-2), "r_child mismatch"

    print("KERNEL_OK")
</pallas_src>

<mosaic_0001>
module attributes {stable_mosaic.version = 11 : i64} {
  func.func @_generate_node_kernel(%arg0: i32, %arg1: memref<8x32xbf16, #tpu.memory_space<vmem>>, %arg2: memref<8x32xbf16, #tpu.memory_space<vmem>>, %arg3: memref<8x32xbf16, #tpu.memory_space<vmem>>, %arg4: memref<96x256xbf16, #tpu.memory_space<vmem>>, %arg5: memref<1x256xf32, #tpu.memory_space<vmem>>, %arg6: memref<8x128xf32, #tpu.memory_space<vmem>>) attributes {dimension_semantics = [#tpu.dimension_semantics<parallel>], iteration_bounds = array<i64: 1>, scalar_prefetch = 0 : i64, scratch_operands = 0 : i64, tpu.core_type = #tpu.core_type<tc>, window_params = [{transform_indices = @transform_0, window_bounds = array<i64: 8, 32>}, {transform_indices = @transform_1, window_bounds = array<i64: 8, 32>}, {transform_indices = @transform_2, window_bounds = array<i64: 8, 32>}, {pipeline_mode = #tpu.pipeline_mode<synchronous>, transform_indices = @transform_3, window_bounds = array<i64: 96, 256>}, {pipeline_mode = #tpu.pipeline_mode<synchronous>, transform_indices = @transform_4, window_bounds = array<i64: 1, 256>}, {transform_indices = @transform_5, window_bounds = array<i64: 8, 128>}]} {
    %c0 = arith.constant 0 : index
    %c0_0 = arith.constant 0 : index
    %0 = vector.load %arg1[%c0, %c0_0] : memref<8x32xbf16, #tpu.memory_space<vmem>>, vector<8x32xbf16>
    %c0_1 = arith.constant 0 : index
    %c0_2 = arith.constant 0 : index
    %1 = vector.load %arg4[%c0_1, %c0_2] : memref<96x256xbf16, #tpu.memory_space<vmem>>, vector<32x256xbf16>
    %cst = arith.constant dense<0.000000e+00> : vector<8x256xf32>
    %2 = tpu.matmul %0, %1, %cst {dimension_numbers = #tpu.dot_dimension_numbers<[1], [0], [0], [1], [0, 0, 1, 1], [], []>} : vector<8x32xbf16>, vector<32x256xbf16>, vector<8x256xf32> -> vector<8x256xf32>
    %c0_3 = arith.constant 0 : index
    %c0_4 = arith.constant 0 : index
    %3 = vector.load %arg2[%c0_3, %c0_4] : memref<8x32xbf16, #tpu.memory_space<vmem>>, vector<8x32xbf16>
    %c32 = arith.constant 32 : index
    %c0_5 = arith.constant 0 : index
    %4 = vector.load %arg4[%c32, %c0_5] : memref<96x256xbf16, #tpu.memory_space<vmem>>, vector<32x256xbf16>
    %cst_6 = arith.constant dense<0.000000e+00> : vector<8x256xf32>
    %5 = tpu.matmul %3, %4, %cst_6 {dimension_numbers = #tpu.dot_dimension_numbers<[1], [0], [0], [1], [0, 0, 1, 1], [], []>} : vector<8x32xbf16>, vector<32x256xbf16>, vector<8x256xf32> -> vector<8x256xf32>
    %6 = arith.addf %2, %5 : vector<8x256xf32>
    %c0_7 = arith.constant 0 : index
    %c0_8 = arith.constant 0 : index
    %7 = vector.load %arg3[%c0_7, %c0_8] : memref<8x32xbf16, #tpu.memory_space<vmem>>, vector<8x32xbf16>
    %c64 = arith.constant 64 : index
    %c0_9 = arith.constant 0 : index
    %8 = vector.load %arg4[%c64, %c0_9] : memref<96x256xbf16, #tpu.memory_space<vmem>>, vector<32x256xbf16>
    %cst_10 = arith.constant dense<0.000000e+00> : vector<8x256xf32>
    %9 = tpu.matmul %7, %8, %cst_10 {dimension_numbers = #tpu.dot_dimension_numbers<[1], [0], [0], [1], [0, 0, 1, 1], [], []>} : vector<8x32xbf16>, vector<32x256xbf16>, vector<8x256xf32> -> vector<8x256xf32>
    %10 = arith.addf %6, %9 : vector<8x256xf32>
    %c0_11 = arith.constant 0 : index
    %c0_12 = arith.constant 0 : index
    %11 = vector.load %arg5[%c0_11, %c0_12] : memref<1x256xf32, #tpu.memory_space<vmem>>, vector<1x256xf32>
    %12 = vector.broadcast %11 : vector<1x256xf32> to vector<8x256xf32>
    %13 = arith.addf %10, %12 : vector<8x256xf32>
    %14 = vector.extract_strided_slice %13 {offsets = [0, 0], sizes = [8, 128], strides = [1, 1]} : vector<8x256xf32> to vector<8x128xf32>
    %15 = math.tanh %14 : vector<8x128xf32>
    %16 = vector.extract_strided_slice %13 {offsets = [0, 128], sizes = [8, 128], strides = [1, 1]} : vector<8x256xf32> to vector<8x128xf32>
    %17 = arith.negf %16 : vector<8x128xf32>
    %18 = math.exp %17 : vector<8x128xf32>
    %cst_13 = arith.constant 1.000000e+00 : f32
    %19 = vector.broadcast %cst_13 : f32 to vector<8x128xf32>
    %20 = arith.addf %19, %18 : vector<8x128xf32>
    %21 = arith.divf %19, %20 : vector<8x128xf32>
    %22 = arith.mulf %15, %21 : vector<8x128xf32>
    %c0_14 = arith.constant 0 : index
    %c0_15 = arith.constant 0 : index
    %23 = vector.load %arg6[%c0_14, %c0_15] : memref<8x128xf32, #tpu.memory_space<vmem>>, vector<8x128xf32>
    tpu.vector_store %arg6[%c0_14, %c0_15], %22 {strides = array<i32>} : memref<8x128xf32, #tpu.memory_space<vmem>>, vector<8x128xf32>,
    return
  }
  func.func @transform_0(%arg0: i32) -> (i32, i32) {
    %c0_i32 = arith.constant 0 : i32
    %c0_i32_0 = arith.constant 0 : i32
    return %arg0, %c0_i32 : i32, i32
  }
  func.func @transform_1(%arg0: i32) -> (i32, i32) {
    %c0_i32 = arith.constant 0 : i32
    %c0_i32_0 = arith.constant 0 : i32
    return %arg0, %c0_i32 : i32, i32
  }
  func.func @transform_2(%arg0: i32) -> (i32, i32) {
    %c0_i32 = arith.constant 0 : i32
    %c0_i32_0 = arith.constant 0 : i32
    return %arg0, %c0_i32 : i32, i32
  }
  func.func @transform_3(%arg0: i32) -> (i32, i32) {
    %c0_i32 = arith.constant 0 : i32
    %c0_i32_0 = arith.constant 0 : i32
    %c0_i32_1 = arith.constant 0 : i32
    return %c0_i32, %c0_i32_0 : i32, i32
  }
  func.func @transform_4(%arg0: i32) -> (i32, i32) {
    %c0_i32 = arith.constant 0 : i32
    %c0_i32_0 = arith.constant 0 : i32
    %c0_i32_1 = arith.constant 0 : i32
    return %c0_i32, %c0_i32_0 : i32, i32
  }
  func.func @transform_5(%arg0: i32) -> (i32, i32) {
    %c0_i32 = arith.constant 0 : i32
    %c0_i32_0 = arith.constant 0 : i32
    return %arg0, %c0_i32 : i32, i32
  }
}

</mosaic_0001>

<bundles_post_ra>
// kernel: tpu_custom_call.1
= control target key start
LH: loop header
LB: loop body
LE: loop exit
PB: predicated region body
PF: predicated region fallthrough
CT: control target
= control target key end

     0   :  { %10 = vsyncpa [#allocation3], 0  ;;  %s562_s0 = inlined_call_operand.hbm [shape: bf16[8,32], index: 0, kind: input, shape index: {}]   ;;  %s563_s1 = inlined_call_operand.hbm [shape: bf16[8,32], index: 1, kind: input, shape index: {}]   ;;  %s564_s2 = inlined_call_operand.hbm [shape: bf16[8,32], index: 2, kind: input, shape index: {}]   ;;  %s565_s3 = inlined_call_operand.hbm [shape: bf16[96,256], index: 3, kind: input, shape index: {}]   ;;  %s566_s4 = inlined_call_operand.vmem [shape: f32[1,256], index: 4, kind: input, shape index: {}]   ;;  %s567_s5 = inlined_call_operand.hbm [shape: f32[8,128], index: 5, kind: output, shape index: {}]  }
   0x1   :  { %11 = vsyncpa [#allocation6], 0 }
   0x2   :  { %12 = vsyncpa [#allocation9], 0  ;;  %s30_s20 = sshll.u32 %s563_s1, 4  ;;  %s31_s20 = int_to_ptr.hbm [resolvable:$true] %s30_s20 }
   0x3   :  { %13 = vsyncpa [#allocation4], 0  ;;  %s501_s21 = smov [#allocation5]   ;;  %s19_s25 = sshll.u32 %s562_s0, 4  ;;  %s20_s25 = int_to_ptr.hbm [resolvable:$true] %s19_s25 }
   0x4   :  { %s32_s22 = sshll.u32 %s501_s21, 4  ;;  %s502_s26 = smov [#allocation2]   ;;  %s33_s22 = int_to_ptr.vmem [resolvable:$true] %s32_s22 }
   0x5   :  { %35 = dma.hbm_to_vmem [thread:$0]  %s31_s20, 64, %s33_s22, [#allocation6]  }
   0x6   :  { %s21_s27 = sshll.u32 %s502_s26, 4  ;;  %s41_s30 = sshll.u32 %s564_s2, 4  ;;  %s22_s27 = int_to_ptr.vmem [resolvable:$true] %s21_s27  ;;  %s42_s30 = int_to_ptr.hbm [resolvable:$true] %s41_s30 }
   0x7   :  { %24 = dma.hbm_to_vmem [thread:$0]  %s20_s25, 64, %s22_s27, [#allocation3]  }
   0x8   :  { %s51_s7 = sshll.u32 %s565_s3, 4  ;;  %s503_s8 = smov [#allocation7]   ;;  %s52_s7 = int_to_ptr.hbm [resolvable:$true] %s51_s7 }
   0x9   :  { %s43_s9 = sshll.u32 %s503_s8, 4  ;;  %s504_s0 = smov [#allocation8]   ;;  %s44_s9 = int_to_ptr.vmem [resolvable:$true] %s43_s9 }
   0xa   :  { %46 = dma.hbm_to_vmem [thread:$0]  %s42_s30, 64, %s44_s9, [#allocation6]  }
   0xb   :  { %s53_s10 = sshll.u32 %s504_s0, 4  ;;  %s505_s11 = smov 128   ;;  %s54_s10 = int_to_ptr.vmem [resolvable:$true] %s53_s10 }
   0xc   :  { %s506_s12 = smov 8  }
   0xd   :  { %59 = dma.hbm_to_vmem [thread:$0]  %s52_s7, 1536, %s54_s10, [#allocation9], %s505_s11, %s505_s11, %s506_s12  }
   0xe   :  { %493 = dma.done.wait [#allocation3], 64  }
   0xf   :  { %494 = vsyncadd [#allocation3], 4294967232 }
  0x10   :  { %495 = dma.done.wait [#allocation6], 128  }
  0x11   :  { %496 = vsyncadd [#allocation6], 4294967168 }
  0x12   :  { %497 = dma.done.wait [#allocation9], 1536  }
  0x13   :  { %498 = vsyncadd [#allocation9], 4294965760  ;;  %v354_v0 = vld [vmem:[#allocation8 + $0x34] sm:$0xf]  ;;  %v305_v1 = vld [vmem:[#allocation8 + $0x38] sm:$0xf0] }
  0x14   :  { %v350_v2 = vld [vmem:[#allocation8 + $0x14] sm:$0xf]  ;;  %v308_v3 = vor.u32 %v354_v0, %v305_v1  ;;  %v323_v4 = vld [vmem:[#allocation8 + $0x18] sm:$0xf0]  ;;  %v352_v5 = vld [vmem:[#allocation8 + $0x24] sm:$0xf] }
  0x15   :  { %v297_v6 = vld [vmem:[#allocation8 + $0x28] sm:$0xf0]  ;;  %v326_v7 = vor.u32 %v350_v2, %v323_v4  ;;  %v348_v8 = vld [vmem:[#allocation8 + $0x4] sm:$0xf]  ;;  %v303_v10 = vld [vmem:[#allocation8 + $0x30] sm:$0xf] }
  0x16   :  { %v315_v9 = vld [vmem:[#allocation8 + $0x8] sm:$0xf0]  ;;  %132 = vmatpush.bf16.msra.mxu1 %v308_v3  ;;  %v300_v11 = vor.u32 %v352_v5, %v297_v6  ;;  %v355_v12 = vld [vmem:[#allocation8 + $0x34] sm:$0xf0]  ;;  %vm109_vm0 = vcmask 261120   ;;  %s281_s16 = sshll.u32 %s567_s5, 4  ;;  %s282_s16 = int_to_ptr.hbm [resolvable:$true] %s281_s16 }
  0x17   :  { %181 = vmatpush.bf16.msra.mxu3 %v326_v7  ;;  %v318_v13 = vor.u32 %v348_v8, %v315_v9  ;;  %v304_v14 = vor.u32 %v355_v12, %v303_v10  ;;  %v358_v15 = vld [vmem:[#allocation8 + $0x54] sm:$0xf]  ;;  %v341_v16 = vld [vmem:[#allocation8 + $0x58] sm:$0xf0]  ;;  %v295_v17 = vld [vmem:[#allocation8 + $0x20] sm:$0xf] }
  0x18   :  { %v84_v18 = vld [vmem:[#allocation5] sm:$0xf]  ;;  %v344_v19 = vor.u32 %v358_v15, %v341_v16  ;;  %v353_v20 = vld [vmem:[#allocation8 + $0x24] sm:$0xf0]  ;;  %v321_v21 = vld [vmem:[#allocation8 + $0x10] sm:$0xf] }
  0x19   :  { %v351_v22 = vld [vmem:[#allocation8 + $0x14] sm:$0xf0]  ;;  %119 = vmatpush.bf16.msra.mxu0 %v304_v14  ;;  %v296_v23 = vor.u32 %v353_v20, %v295_v17  ;;  %v356_v25 = vld [vmem:[#allocation8 + $0x44] sm:$0xf]  ;;  %v333_v26 = vld [vmem:[#allocation8 + $0x48] sm:$0xf0] }
  0x1a   :  { %v322_v24 = vor.u32 %v351_v22, %v321_v21  ;;  %v313_v27 = vld [vmem:[#allocation8] sm:$0xf]  ;;  %133 = vmatpush.bf16.msra.mxu1 %v300_v11  ;;  %v349_v28 = vld [vmem:[#allocation8 + $0x4] sm:$0xf0]  ;;  %v339_v29 = vld [vmem:[#allocation8 + $0x50] sm:$0xf]  ;;  %v336_v32 = vor.u32 %v356_v25, %v333_v26 }
  0x1b   :  { %v359_v30 = vld [vmem:[#allocation8 + $0x54] sm:$0xf0]  ;;  %182 = vmatpush.bf16.msra.mxu3 %v318_v13  ;;  %v79_v31 = vld [vmem:[#allocation2] sm:$0xf]  ;;  %v331_v34 = vld [vmem:[#allocation8 + $0x40] sm:$0xf]  ;;  %v314_v36 = vor.u32 %v349_v28, %v313_v27 }
  0x1c   :  { %v340_v33 = vor.u32 %v359_v30, %v339_v29  ;;  %v357_v35 = vld [vmem:[#allocation8 + $0x44] sm:$0xf0]  ;;  %168 = vmatpush.bf16.msra.mxu2 %v322_v24  ;;  %v188_v38 = vld [vmem:[#allocation7] sm:$0xf]  ;;  %v244_v44 = vld [vmem:[%s566_s4] sm:$0x3] }
  0x1d   :  { %310 = vmatmul.msk.bf16.vlgmr.msra.gmra.mxu1 %vm109_vm0, %v84_v18  ;;  %120 = vmatpush.bf16.msra.mxu0 %v296_v23  ;;  %v332_v37 = vor.u32 %v357_v35, %v331_v34  ;;  %v247_v48 = vperm.slane %v244_v44, 1  ;;  %v246_v61 = vperm.slane %v244_v44, 0  ;;  %s507_s4 = smov [#allocation10]  }
  0x1e   :  { %235 = vmatpush.bf16.msrb.mxu1 %v344_v19  ;;  %328 = vmatmul.msk.bf16.vlgmr.msra.gmra.mxu3 %vm109_vm0, %v79_v31  ;;  %s279_s13 = sshll.u32 %s507_s4, 4  ;;  %s280_s13 = int_to_ptr.vmem [resolvable:$true] %s279_s13 }
  0x20   :  { %309 = vmatmul.msk.bf16.vlgmr.msra.gmra.mxu0 %vm109_vm0, %v84_v18  ;;  %169 = vmatpush.bf16.msra.mxu2 %v314_v36 }
  0x21   :  { %222 = vmatpush.bf16.msrb.mxu0 %v340_v33 }
  0x22   :  { %236 = vmatpush.bf16.msrb.mxu1 %v336_v32 }
  0x23   :  { %327 = vmatmul.msk.bf16.vlgmr.msra.gmra.mxu2 %vm109_vm0, %v79_v31 }
  0x25   :  { %223 = vmatpush.bf16.msrb.mxu0 %v332_v37 }
  0x2d   :  { %346 = vmatmul.msk.bf16.vlgmr.msrb.gmra.mxu1 %vm109_vm0, %v188_v38 }
  0x30   :  { %345 = vmatmul.msk.bf16.vlgmr.msrb.gmra.mxu0 %vm109_vm0, %v188_v38 }
  0x9a   :  { %v135_v39 = vpop.f32.mrf.mxu1 }
  0x9d   :  { %v122_v40 = vpop.f32.mrf.mxu0 }
  0xa1   :  { %v184_v41 = vpop.f32.mrf.mxu3 }
  0xa2   :  { %v137_v42 = vpop.f32.mrf.mxu1  ;;  %v185_v46 = vadd.f32 %v184_v41, %v135_v39 }
  0xa5   :  { %v124_v43 = vpop.f32.mrf.mxu0 }
  0xa6   :  { %v171_v45 = vpop.f32.mrf.mxu2 }
  0xa7   :  { %v172_v59 = vadd.f32 %v171_v45, %v122_v40 }
  0xa9   :  { %v186_v47 = vpop.f32.mrf.mxu3 }
  0xaa   :  { %v238_v49 = vpop.f32.mrf.mxu1 }
  0xab   :  { %v243_v50 = vadd.f32 %v238_v49, %v185_v46 }
  0xad   :  { %v251_v51 = vadd.f32 %v247_v48, %v243_v50  ;;  %v225_v52 = vpop.f32.mrf.mxu0 }
  0xae   :  { %v173_v53 = vpop.f32.mrf.mxu2  ;;  %v242_v60 = vadd.f32 %v225_v52, %v172_v59 }
  0xaf   :  { %v347_v54 = vmul.f32 -1.442695, %v251_v51 }
  0xb0   :  { %v250_v63 = vadd.f32 %v246_v61, %v242_v60 }
  0xb1   :  { %367 = vpow2.f32 %v347_v54 }
  0xb2   :  { %v240_v55 = vpop.f32.mrf.mxu1 }
  0xb5   :  { %v227_v56 = vpop.f32.mrf.mxu0 }
  0xb7   :  { %v368_v57 = vpop.eup %367 }
  0xb8   :  { %v256_v58 = vadd.f32 1.0, %v368_v57 }
  0xba   :  { %369 = vrcp.f32 %v256_v58  ;;  %v268_v2 = vand.u32 2147483648, %v256_v58  ;;  %v266_v4 = vand.u32 2147483647, %v256_v58  ;;  %vm262_vm2 = vweird.f32 %v256_v58 }
  0xbb   :  { %371 = vtanh.f32 %v250_v63 }
  0xbc   :  { %v269_v6 = vor.u32 1.1754944e-38, %v268_v2  ;;  %vm267_vm4 = vcmp.eq.f32.partialorder %v266_v4, 8.507059e+37 }
  0xc0   :  { %v370_v62 = vpop.eup %369 }
  0xc1   :  { %v258_v0 = vmul.f32 %v370_v62, %v256_v58  ;;  %vm263_vm1 = vweird.f32 %v370_v62  ;;  %v372_v8 = vpop.eup %371 }
  0xc2   :  { %vm264_vm3 = vmor %vm262_vm2, %vm263_vm1 }
  0xc3   :  { %v259_v1 = vsub.f32 1.0, %v258_v0 }
  0xc5   :  { %v260_v3 = vmul.f32 %v370_v62, %v259_v1 }
  0xc7   :  { %v261_v5 = vadd.f32 %v370_v62, %v260_v3 }
  0xc9   :  { %v265_v7 = vsel %vm264_vm3, %v370_v62, %v261_v5 }
  0xca   :  { %v270_v9 = vsel %vm267_vm4, %v269_v6, %v265_v7 }
  0xcb   :  { %v272_v10 = vmul.f32 %v372_v8, %v270_v9 }
  0xcd   :  { %273 = vst [vmem:[#allocation10] sm:$0xff] %v272_v10 }
  0xce   :  { %284 = dma.vmem_to_hbm [thread:$0]  %s280_s13, 128, %s282_s16, [#allocation4]  }
  0xcf   :  { %499 = dma.done.wait [#allocation4], 128  }
  0xd0   :  { %500 = vsyncadd [#allocation4], 4294967168 }
  0xd1   :  { %289 = vsyncpa [#allocation3], 1 }
  0xd2   :  { %290 = vsyncpa [#allocation6], 1 }
  0xd3   :  { %291 = vsyncpa [#allocation9], 1 }
  0xd4   :  { %292 = vsyncpa [#allocation4], 1 }

</bundles_post_ra>
